<compile_context>
chip_gen: v7x
topology: tpu7x:2x2x1
jax: 0.10.0
libtpu: 0.0.40
codegen_flags: <defaults>
</compile_context>

<pallas_src>
import functools

import jax
import jax.numpy as jnp
import numpy as np
from jax import lax
from jax.experimental import pallas as pl
from jax.experimental.pallas import tpu as pltpu


def _yolo_loss_kernel(pred_ref, targ_ref, out_ref, *, S, l_coord, l_noobj,
                      num_channels, ms_valid, tile_rows, sub_rows, need_mask,
                      inv_n):
    """One grid step: a (C, tile_rows, 128) block of cells -> one partial sum."""
    tile_idx = pl.program_id(0)
    inv_S = 1.0 / S
    n_sub = tile_rows // sub_rows

    def sub_chunk(j, acc):
        r0 = pl.multiple_of(j * sub_rows, sub_rows)

        def P(c):
            return pred_ref[c, pl.ds(r0, sub_rows), :].astype(jnp.float32)

        def T(c):
            return targ_ref[c, pl.ds(r0, sub_rows), :].astype(jnp.float32)

        t4 = T(4)
        coo = t4 > 0.0                       # object cells

        # ---------------- no-object term (confidence channels 4 and 9) --------
        p4 = P(4)
        p9 = P(9)
        d4 = p4 - t4
        d9 = p9 - T(9)
        noo_cell = d4 * d4 + d9 * d9

        # ------------- two predicted boxes vs. target box 0 (torch uses it) ---
        p0x, p0y, p0w, p0h = P(0), P(1), P(2), P(3)
        p1x, p1y, p1w, p1h = P(5), P(6), P(7), P(8)
        t0x, t0y, t0w, t0h = T(0), T(1), T(2), T(3)
        t1x, t1y, t1w, t1h = T(5), T(6), T(7), T(8)

        def xyxy(x, y, w, h):
            cx = x * inv_S
            cy = y * inv_S
            hw = 0.5 * w
            hh = 0.5 * h
            return cx - hw, cy - hh, cx + hw, cy + hh

        a0 = xyxy(p0x, p0y, p0w, p0h)
        a1 = xyxy(p1x, p1y, p1w, p1h)
        bx1, by1, bx2, by2 = xyxy(t0x, t0y, t0w, t0h)
        area_b = (bx2 - bx1) * (by2 - by1)

        def iou(box):
            ax1, ay1, ax2, ay2 = box
            iw = jnp.maximum(jnp.minimum(ax2, bx2) - jnp.maximum(ax1, bx1), 0.0)
            ih = jnp.maximum(jnp.minimum(ay2, by2) - jnp.maximum(ay1, by1), 0.0)
            inter = iw * ih
            area_a = (ax2 - ax1) * (ay2 - ay1)
            # Masked denominator: no 0/0 on empty cells, exact on object cells.
            denom = jnp.where(coo, area_a + area_b - inter, 1.0)
            return inter / denom

        iou0 = iou(a0)
        iou1 = iou(a1)
        resp_is_0 = iou0 >= iou1             # first box wins ties (torch argmax)
        max_iou = jnp.maximum(iou0, iou1)

        def sel(a, b):
            return jnp.where(resp_is_0, a, b)

        pr_x, pr_y = sel(p0x, p1x), sel(p0y, p1y)
        pr_w, pr_h = sel(p0w, p1w), sel(p0h, p1h)
        pr_c = sel(p4, p9)                   # responsible pred confidence
        pn_c = sel(p9, p4)                   # not-responsible pred confidence
        tr_x, tr_y = sel(t0x, t1x), sel(t0y, t1y)
        tr_w, tr_h = sel(t0w, t1w), sel(t0h, t1h)

        contain_cell = (pr_c - max_iou) ** 2

        # sqrt guarded only on non-object cells (discarded by the mask below);
        # object cells keep exact torch behaviour.
        s_prw = jnp.sqrt(jnp.where(coo, pr_w, 1.0))
        s_prh = jnp.sqrt(jnp.where(coo, pr_h, 1.0))
        s_trw = jnp.sqrt(jnp.where(coo, tr_w, 1.0))
        s_trh = jnp.sqrt(jnp.where(coo, tr_h, 1.0))
        loc_cell = ((pr_x - tr_x) ** 2 + (pr_y - tr_y) ** 2
                    + (s_prw - s_trw) ** 2 + (s_prh - s_trh) ** 2)

        not_contain_cell = pn_c * pn_c       # torch forces target conf to 0

        # ---------------- class term folded into the per-cell object loss -----
        cls = jnp.zeros_like(t4)
        for c in range(10, num_channels):
            dc = P(c) - T(c)
            cls = cls + dc * dc

        obj_cell = (l_coord * loc_cell + 2.0 * contain_cell
                    + not_contain_cell + cls)

        per_cell = jnp.where(coo, obj_cell, l_noobj * noo_cell)

        if need_mask:
            # Rows past ms_valid belong to the ragged last grid block (garbage).
            row = (tile_idx * tile_rows + r0
                   + lax.broadcasted_iota(jnp.int32, (sub_rows, 128), 0))
            per_cell = jnp.where(row < ms_valid, per_cell, 0.0)

        return acc + per_cell

    acc = lax.fori_loop(0, n_sub, sub_chunk,
                        jnp.zeros((sub_rows, 128), jnp.float32), unroll=True)
    out_ref[0, 0] = jnp.sum(acc) * inv_n


def _round_up(x, m):
    return (x + m - 1) // m * m


def _cdiv(a, b):
    return (a + b - 1) // b


def yolo_loss(pred, target, *, S, l_coord=5.0, l_noobj=0.5,
              cells_per_step=16384, input_dtype=None):
    """YOLO-v1 (B=2) loss.  pred/target: (N, S, S, 10 + classno)."""
    N, Si, Sj, C = pred.shape
    assert target.shape == pred.shape
    M = N * Si * Sj

    # Optional bf16 input cast: halves HBM bytes on a memory-bound kernel.
    # All in-kernel math stays f32 (kernel casts on load).
    if input_dtype is not None:
        pred = pred.astype(input_dtype)
        target = target.astype(input_dtype)

    # Channel-major layout, cells grouped into 128-lane rows:
    #   (N,S,S,C) -> (M,C) -> (C,M) -> (C, MS, 128)
    # allow_input_fusion below lets XLA fuse this relayout (and the pad) into
    # the pallas_call input fetch instead of separate HBM passes.
    p2 = jnp.transpose(pred.reshape(M, C))
    t2 = jnp.transpose(target.reshape(M, C))

    m_pad = _round_up(M, 8 * 128)            # MS becomes a multiple of 8
    if m_pad != M:
        # Padded cells: pred == target == 0 -> no-object cells contributing 0.
        p2 = jnp.pad(p2, ((0, 0), (0, m_pad - M)))
        t2 = jnp.pad(t2, ((0, 0), (0, m_pad - M)))
    MS = m_pad // 128
    p3 = p2.reshape(C, MS, 128)
    t3 = t2.reshape(C, MS, 128)

    # Tile the cell-row axis.  tile_rows is always a multiple of 8 so every
    # per-channel slab is whole (8,128) vregs.  The default block is 16K cells
    # (~2 MiB/input f32), comfortably inside every generation's scoped VMEM
    # when double-buffered.
    tile_rows = min(max(8, _round_up(cells_per_step // 128, 8)), MS)
    if MS > 8:
        # At least 2 grid steps so the "parallel" axis can use both TCs (v7x).
        tile_rows = min(tile_rows, _round_up(_cdiv(MS, 2), 8))
    num_tiles = _cdiv(MS, tile_rows)
    need_mask = (MS % tile_rows) != 0
    sub_rows = 8

    kernel = functools.partial(
        _yolo_loss_kernel, S=float(S), l_coord=float(l_coord),
        l_noobj=float(l_noobj), num_channels=C, ms_valid=MS,
        tile_rows=tile_rows, sub_rows=sub_rows, need_mask=need_mask,
        inv_n=1.0 / float(N))

    itemsize = jnp.dtype(p3.dtype).itemsize
    cost = pl.CostEstimate(
        flops=int(150 * m_pad),
        transcendentals=int(6 * m_pad),
        bytes_accessed=int(2 * C * m_pad * itemsize + num_tiles * 4))

    partials = pl.pallas_call(
        kernel,
        out_shape=jax.ShapeDtypeStruct((num_tiles, 1), jnp.float32),
        grid_spec=pltpu.PrefetchScalarGridSpec(
            num_scalar_prefetch=0,
            grid=(num_tiles,),
            in_specs=[pl.BlockSpec((C, tile_rows, 128), lambda i: (0, i, 0)),
                      pl.BlockSpec((C, tile_rows, 128), lambda i: (0, i, 0))],
            out_specs=pl.BlockSpec((1, 1), lambda i: (i, 0),
                                   memory_space=pltpu.MemorySpace.SMEM)),
        compiler_params=pltpu.CompilerParams(
            dimension_semantics=("parallel",),
            allow_input_fusion=[True, True]),
        cost_estimate=cost,
    )(p3, t3)

    # Per-tile partials are already divided by N; single tiny epilogue sum.
    return jnp.sum(partials)


# -------- pure numpy reference that mirrors the PyTorch forward exactly --------
def ref_loss_np(pred, target, *, S, l_coord=5.0, l_noobj=0.5):
    pred = np.asarray(pred, np.float32)
    target = np.asarray(target, np.float32)
    N = pred.shape[0]
    C = pred.shape[-1]
    p = pred.reshape(-1, C)
    t = target.reshape(-1, C)
    coo = t[:, 4] > 0
    noo = t[:, 4] == 0

    coo_pred, coo_t = p[coo], t[coo]
    box_pred = coo_pred[:, :10].reshape(-1, 5)
    box_t = coo_t[:, :10].reshape(-1, 5)
    class_pred, class_t = coo_pred[:, 10:], coo_t[:, 10:]
    noo_p, noo_t = p[noo], t[noo]
    nooobj = float(np.sum((noo_p[:, 4] - noo_t[:, 4]) ** 2)
                   + np.sum((noo_p[:, 9] - noo_t[:, 9]) ** 2))

    loc = contain = notcontain = 0.0
    for i in range(0, box_t.shape[0], 2):
        b1 = box_pred[i:i + 2]
        b1xy = np.zeros((2, 4), np.float32)
        b1xy[:, :2] = b1[:, :2] / S - 0.5 * b1[:, 2:4]
        b1xy[:, 2:] = b1[:, :2] / S + 0.5 * b1[:, 2:4]
        b2 = box_t[i]
        b2xy = np.zeros((4,), np.float32)
        b2xy[:2] = b2[:2] / S - 0.5 * b2[2:4]
        b2xy[2:] = b2[:2] / S + 0.5 * b2[2:4]
        lt = np.maximum(b1xy[:, :2], b2xy[:2])
        rb = np.minimum(b1xy[:, 2:], b2xy[2:])
        wh = np.clip(rb - lt, 0.0, None)
        inter = wh[:, 0] * wh[:, 1]
        a1 = (b1xy[:, 2] - b1xy[:, 0]) * (b1xy[:, 3] - b1xy[:, 1])
        a2 = (b2xy[2] - b2xy[0]) * (b2xy[3] - b2xy[1])
        iou = inter / (a1 + a2 - inter)
        mi = int(np.argmax(iou))
        miou = iou[mi]
        pr, tr, pn = box_pred[i + mi], box_t[i + mi], box_pred[i + 1 - mi]
        contain += float((pr[4] - miou) ** 2)
        loc += float(np.sum((pr[:2] - tr[:2]) ** 2)
                     + np.sum((np.sqrt(pr[2:4]) - np.sqrt(tr[2:4])) ** 2))
        notcontain += float(pn[4] ** 2)
    cls = float(np.sum((class_pred - class_t) ** 2))
    return (l_coord * loc + 2.0 * contain + notcontain + l_noobj * nooobj + cls) / N


if __name__ == "__main__":
    # cfg: cell_number = 7, classno = 20  ->  C = 2*5 + 20 = 30
    S = 7
    CLASSNO = 20
    C = 2 * 5 + CLASSNO
    N = 2

    key = jax.random.PRNGKey(0)
    k1, k2 = jax.random.split(key)
    # predictions in (0,1) (post-sigmoid style) so sqrt(w), sqrt(h) are defined
    pred = jax.random.uniform(k1, (N, S, S, C), jnp.float32,
                              minval=0.05, maxval=0.95)

    tgt = np.zeros((N, S, S, C), np.float32)

    def put_obj(t_np, b, i, j, x, y, w, h, cls_idx):
        box = np.array([x, y, w, h, 1.0], np.float32)
        t_np[b, i, j, 0:5] = box
        t_np[b, i, j, 5:10] = box          # both target boxes identical (standard)
        t_np[b, i, j, 10 + cls_idx] = 1.0

    put_obj(tgt, 0, 1, 2, 2.3, 1.6, 0.40, 0.55, 3)
    put_obj(tgt, 0, 4, 5, 5.1, 4.4, 0.25, 0.30, 12)
    put_obj(tgt, 1, 0, 6, 6.2, 0.7, 0.60, 0.20, 7)
    put_obj(tgt, 1, 3, 3, 3.5, 3.5, 0.35, 0.45, 19)
    target = jnp.asarray(tgt)

    # --- f32 path (bit-parity with the torch/numpy reference) ---
    loss = jax.block_until_ready(yolo_loss(pred, target, S=S))
    ref = ref_loss_np(np.asarray(pred), tgt, S=S)
    np.testing.assert_allclose(float(loss), ref, rtol=1e-5, atol=1e-5)

    # --- bf16-input path (halves HBM traffic; in-kernel math stays f32) ---
    loss_bf = jax.block_until_ready(
        yolo_loss(pred, target, S=S, input_dtype=jnp.bfloat16))
    pred_bf = np.asarray(pred.astype(jnp.bfloat16).astype(jnp.float32))
    tgt_bf = np.asarray(target.astype(jnp.bfloat16).astype(jnp.float32))
    ref_bf = ref_loss_np(pred_bf, tgt_bf, S=S)
    np.testing.assert_allclose(float(loss_bf), ref_bf, rtol=1e-4, atol=1e-4)

    # --- larger shape: exercises multi-tile grid + ragged-tail row masking ---
    S2, N2 = 13, 16
    k3, _ = jax.random.split(k2)
    pred2 = jax.random.uniform(k3, (N2, S2, S2, C), jnp.float32,
                               minval=0.05, maxval=0.95)
    tgt2 = np.zeros((N2, S2, S2, C), np.float32)
    rng = np.random.RandomState(0)
    for b in range(N2):
        for _ in range(3):
            i, j = rng.randint(0, S2, size=2)
            x = float(j) + rng.uniform(0.1, 0.9)
            y = float(i) + rng.uniform(0.1, 0.9)
            w, h = rng.uniform(0.1, 0.8, size=2)
            put_obj(tgt2, b, int(i), int(j), x, y, float(w), float(h),
                    int(rng.randint(0, CLASSNO)))
    target2 = jnp.asarray(tgt2)
    loss2 = jax.block_until_ready(
        yolo_loss(pred2, target2, S=S2, cells_per_step=2048))
    ref2 = ref_loss_np(np.asarray(pred2), tgt2, S=S2)
    np.testing.assert_allclose(float(loss2), ref2, rtol=1e-4, atol=1e-4)

    print("KERNEL_OK")
</pallas_src>

<mosaic_0001>
module attributes {stable_mosaic.version = 11 : i64} {
  func.func @_yolo_loss_kernel(%arg0: i32, %arg1: memref<30x8x128xf32, #tpu.memory_space<vmem>>, %arg2: memref<30x8x128xf32, #tpu.memory_space<vmem>>, %arg3: memref<1x1xf32, #tpu.memory_space<smem>>) attributes {dimension_semantics = [#tpu.dimension_semantics<parallel>], iteration_bounds = array<i64: 1>, scalar_prefetch = 0 : i64, scratch_operands = 0 : i64, tpu.core_type = #tpu.core_type<tc>, window_params = [{transform_indices = @transform_0, window_bounds = array<i64: 30, 8, 128>}, {transform_indices = @transform_1, window_bounds = array<i64: 30, 8, 128>}, {transform_indices = @transform_2, window_bounds = array<i64: 1, 1>}]} {
    %cst = arith.constant 0.000000e+00 : f32
    %0 = vector.broadcast %cst : f32 to vector<8x128xf32>
    %c0_i32 = arith.constant 0 : i32
    %c8_i32 = arith.constant 8 : i32
    %1 = arith.muli %c0_i32, %c8_i32 : i32
    %2 = tpu.assume_multiple %1, 8 : i32
    %c4 = arith.constant 4 : index
    %3 = arith.index_cast %2 : i32 to index
    %c0 = arith.constant 0 : index
    %4 = vector.load %arg2[%c4, %3, %c0] : memref<30x8x128xf32, #tpu.memory_space<vmem>>, vector<1x8x128xf32>
    %5 = vector.shape_cast %4 : vector<1x8x128xf32> to vector<8x128xf32>
    %cst_0 = arith.constant 0.000000e+00 : f32
    %6 = vector.broadcast %cst_0 : f32 to vector<8x128xf32>
    %7 = arith.cmpf ogt, %5, %6 : vector<8x128xf32>
    %c4_1 = arith.constant 4 : index
    %8 = arith.index_cast %2 : i32 to index
    %c0_2 = arith.constant 0 : index
    %9 = vector.load %arg1[%c4_1, %8, %c0_2] : memref<30x8x128xf32, #tpu.memory_space<vmem>>, vector<1x8x128xf32>
    %10 = vector.shape_cast %9 : vector<1x8x128xf32> to vector<8x128xf32>
    %c9 = arith.constant 9 : index
    %11 = arith.index_cast %2 : i32 to index
    %c0_3 = arith.constant 0 : index
    %12 = vector.load %arg1[%c9, %11, %c0_3] : memref<30x8x128xf32, #tpu.memory_space<vmem>>, vector<1x8x128xf32>
    %13 = vector.shape_cast %12 : vector<1x8x128xf32> to vector<8x128xf32>
    %14 = arith.subf %10, %5 : vector<8x128xf32>
    %c9_4 = arith.constant 9 : index
    %15 = arith.index_cast %2 : i32 to index
    %c0_5 = arith.constant 0 : index
    %16 = vector.load %arg2[%c9_4, %15, %c0_5] : memref<30x8x128xf32, #tpu.memory_space<vmem>>, vector<1x8x128xf32>
    %17 = vector.shape_cast %16 : vector<1x8x128xf32> to vector<8x128xf32>
    %18 = arith.subf %13, %17 : vector<8x128xf32>
    %19 = arith.mulf %14, %14 : vector<8x128xf32>
    %20 = arith.mulf %18, %18 : vector<8x128xf32>
    %21 = arith.addf %19, %20 : vector<8x128xf32>
    %c0_6 = arith.constant 0 : index
    %22 = arith.index_cast %2 : i32 to index
    %c0_7 = arith.constant 0 : index
    %23 = vector.load %arg1[%c0_6, %22, %c0_7] : memref<30x8x128xf32, #tpu.memory_space<vmem>>, vector<1x8x128xf32>
    %24 = vector.shape_cast %23 : vector<1x8x128xf32> to vector<8x128xf32>
    %c1 = arith.constant 1 : index
    %25 = arith.index_cast %2 : i32 to index
    %c0_8 = arith.constant 0 : index
    %26 = vector.load %arg1[%c1, %25, %c0_8] : memref<30x8x128xf32, #tpu.memory_space<vmem>>, vector<1x8x128xf32>
    %27 = vector.shape_cast %26 : vector<1x8x128xf32> to vector<8x128xf32>
    %c2 = arith.constant 2 : index
    %28 = arith.index_cast %2 : i32 to index
    %c0_9 = arith.constant 0 : index
    %29 = vector.load %arg1[%c2, %28, %c0_9] : memref<30x8x128xf32, #tpu.memory_space<vmem>>, vector<1x8x128xf32>
    %30 = vector.shape_cast %29 : vector<1x8x128xf32> to vector<8x128xf32>
    %c3 = arith.constant 3 : index
    %31 = arith.index_cast %2 : i32 to index
    %c0_10 = arith.constant 0 : index
    %32 = vector.load %arg1[%c3, %31, %c0_10] : memref<30x8x128xf32, #tpu.memory_space<vmem>>, vector<1x8x128xf32>
    %33 = vector.shape_cast %32 : vector<1x8x128xf32> to vector<8x128xf32>
    %c5 = arith.constant 5 : index
    %34 = arith.index_cast %2 : i32 to index
    %c0_11 = arith.constant 0 : index
    %35 = vector.load %arg1[%c5, %34, %c0_11] : memref<30x8x128xf32, #tpu.memory_space<vmem>>, vector<1x8x128xf32>
    %36 = vector.shape_cast %35 : vector<1x8x128xf32> to vector<8x128xf32>
    %c6 = arith.constant 6 : index
    %37 = arith.index_cast %2 : i32 to index
    %c0_12 = arith.constant 0 : index
    %38 = vector.load %arg1[%c6, %37, %c0_12] : memref<30x8x128xf32, #tpu.memory_space<vmem>>, vector<1x8x128xf32>
    %39 = vector.shape_cast %38 : vector<1x8x128xf32> to vector<8x128xf32>
    %c7 = arith.constant 7 : index
    %40 = arith.index_cast %2 : i32 to index
    %c0_13 = arith.constant 0 : index
    %41 = vector.load %arg1[%c7, %40, %c0_13] : memref<30x8x128xf32, #tpu.memory_space<vmem>>, vector<1x8x128xf32>
    %42 = vector.shape_cast %41 : vector<1x8x128xf32> to vector<8x128xf32>
    %c8 = arith.constant 8 : index
    %43 = arith.index_cast %2 : i32 to index
    %c0_14 = arith.constant 0 : index
    %44 = vector.load %arg1[%c8, %43, %c0_14] : memref<30x8x128xf32, #tpu.memory_space<vmem>>, vector<1x8x128xf32>
    %45 = vector.shape_cast %44 : vector<1x8x128xf32> to vector<8x128xf32>
    %c0_15 = arith.constant 0 : index
    %46 = arith.index_cast %2 : i32 to index
    %c0_16 = arith.constant 0 : index
    %47 = vector.load %arg2[%c0_15, %46, %c0_16] : memref<30x8x128xf32, #tpu.memory_space<vmem>>, vector<1x8x128xf32>
    %48 = vector.shape_cast %47 : vector<1x8x128xf32> to vector<8x128xf32>
    %c1_17 = arith.constant 1 : index
    %49 = arith.index_cast %2 : i32 to index
    %c0_18 = arith.constant 0 : index
    %50 = vector.load %arg2[%c1_17, %49, %c0_18] : memref<30x8x128xf32, #tpu.memory_space<vmem>>, vector<1x8x128xf32>
    %51 = vector.shape_cast %50 : vector<1x8x128xf32> to vector<8x128xf32>
    %c2_19 = arith.constant 2 : index
    %52 = arith.index_cast %2 : i32 to index
    %c0_20 = arith.constant 0 : index
    %53 = vector.load %arg2[%c2_19, %52, %c0_20] : memref<30x8x128xf32, #tpu.memory_space<vmem>>, vector<1x8x128xf32>
    %54 = vector.shape_cast %53 : vector<1x8x128xf32> to vector<8x128xf32>
    %c3_21 = arith.constant 3 : index
    %55 = arith.index_cast %2 : i32 to index
    %c0_22 = arith.constant 0 : index
    %56 = vector.load %arg2[%c3_21, %55, %c0_22] : memref<30x8x128xf32, #tpu.memory_space<vmem>>, vector<1x8x128xf32>
    %57 = vector.shape_cast %56 : vector<1x8x128xf32> to vector<8x128xf32>
    %c5_23 = arith.constant 5 : index
    %58 = arith.index_cast %2 : i32 to index
    %c0_24 = arith.constant 0 : index
    %59 = vector.load %arg2[%c5_23, %58, %c0_24] : memref<30x8x128xf32, #tpu.memory_space<vmem>>, vector<1x8x128xf32>
    %60 = vector.shape_cast %59 : vector<1x8x128xf32> to vector<8x128xf32>
    %c6_25 = arith.constant 6 : index
    %61 = arith.index_cast %2 : i32 to index
    %c0_26 = arith.constant 0 : index
    %62 = vector.load %arg2[%c6_25, %61, %c0_26] : memref<30x8x128xf32, #tpu.memory_space<vmem>>, vector<1x8x128xf32>
    %63 = vector.shape_cast %62 : vector<1x8x128xf32> to vector<8x128xf32>
    %c7_27 = arith.constant 7 : index
    %64 = arith.index_cast %2 : i32 to index
    %c0_28 = arith.constant 0 : index
    %65 = vector.load %arg2[%c7_27, %64, %c0_28] : memref<30x8x128xf32, #tpu.memory_space<vmem>>, vector<1x8x128xf32>
    %66 = vector.shape_cast %65 : vector<1x8x128xf32> to vector<8x128xf32>
    %c8_29 = arith.constant 8 : index
    %67 = arith.index_cast %2 : i32 to index
    %c0_30 = arith.constant 0 : index
    %68 = vector.load %arg2[%c8_29, %67, %c0_30] : memref<30x8x128xf32, #tpu.memory_space<vmem>>, vector<1x8x128xf32>
    %69 = vector.shape_cast %68 : vector<1x8x128xf32> to vector<8x128xf32>
    %cst_31 = arith.constant 0.142857149 : f32
    %70 = vector.broadcast %cst_31 : f32 to vector<8x128xf32>
    %71 = arith.mulf %24, %70 : vector<8x128xf32>
    %cst_32 = arith.constant 0.142857149 : f32
    %72 = vector.broadcast %cst_32 : f32 to vector<8x128xf32>
    %73 = arith.mulf %27, %72 : vector<8x128xf32>
    %cst_33 = arith.constant 5.000000e-01 : f32
    %74 = vector.broadcast %cst_33 : f32 to vector<8x128xf32>
    %75 = arith.mulf %74, %30 : vector<8x128xf32>
    %cst_34 = arith.constant 5.000000e-01 : f32
    %76 = vector.broadcast %cst_34 : f32 to vector<8x128xf32>
    %77 = arith.mulf %76, %33 : vector<8x128xf32>
    %78 = arith.subf %71, %75 : vector<8x128xf32>
    %79 = arith.subf %73, %77 : vector<8x128xf32>
    %80 = arith.addf %71, %75 : vector<8x128xf32>
    %81 = arith.addf %73, %77 : vector<8x128xf32>
    %cst_35 = arith.constant 0.142857149 : f32
    %82 = vector.broadcast %cst_35 : f32 to vector<8x128xf32>
    %83 = arith.mulf %36, %82 : vector<8x128xf32>
    %cst_36 = arith.constant 0.142857149 : f32
    %84 = vector.broadcast %cst_36 : f32 to vector<8x128xf32>
    %85 = arith.mulf %39, %84 : vector<8x128xf32>
    %cst_37 = arith.constant 5.000000e-01 : f32
    %86 = vector.broadcast %cst_37 : f32 to vector<8x128xf32>
    %87 = arith.mulf %86, %42 : vector<8x128xf32>
    %cst_38 = arith.constant 5.000000e-01 : f32
    %88 = vector.broadcast %cst_38 : f32 to vector<8x128xf32>
    %89 = arith.mulf %88, %45 : vector<8x128xf32>
    %90 = arith.subf %83, %87 : vector<8x128xf32>
    %91 = arith.subf %85, %89 : vector<8x128xf32>
    %92 = arith.addf %83, %87 : vector<8x128xf32>
    %93 = arith.addf %85, %89 : vector<8x128xf32>
    %cst_39 = arith.constant 0.142857149 : f32
    %94 = vector.broadcast %cst_39 : f32 to vector<8x128xf32>
    %95 = arith.mulf %48, %94 : vector<8x128xf32>
    %cst_40 = arith.constant 0.142857149 : f32
    %96 = vector.broadcast %cst_40 : f32 to vector<8x128xf32>
    %97 = arith.mulf %51, %96 : vector<8x128xf32>
    %cst_41 = arith.constant 5.000000e-01 : f32
    %98 = vector.broadcast %cst_41 : f32 to vector<8x128xf32>
    %99 = arith.mulf %98, %54 : vector<8x128xf32>
    %cst_42 = arith.constant 5.000000e-01 : f32
    %100 = vector.broadcast %cst_42 : f32 to vector<8x128xf32>
    %101 = arith.mulf %100, %57 : vector<8x128xf32>
    %102 = arith.subf %95, %99 : vector<8x128xf32>
    %103 = arith.subf %97, %101 : vector<8x128xf32>
    %104 = arith.addf %95, %99 : vector<8x128xf32>
    %105 = arith.addf %97, %101 : vector<8x128xf32>
    %106 = arith.subf %104, %102 : vector<8x128xf32>
    %107 = arith.subf %105, %103 : vector<8x128xf32>
    %108 = arith.mulf %106, %107 : vector<8x128xf32>
    %109 = arith.minimumf %80, %104 : vector<8x128xf32>
    %110 = arith.maximumf %78, %102 : vector<8x128xf32>
    %111 = arith.subf %109, %110 : vector<8x128xf32>
    %cst_43 = arith.constant 0.000000e+00 : f32
    %112 = vector.broadcast %cst_43 : f32 to vector<8x128xf32>
    %113 = arith.maximumf %111, %112 : vector<8x128xf32>
    %114 = arith.minimumf %81, %105 : vector<8x128xf32>
    %115 = arith.maximumf %79, %103 : vector<8x128xf32>
    %116 = arith.subf %114, %115 : vector<8x128xf32>
    %cst_44 = arith.constant 0.000000e+00 : f32
    %117 = vector.broadcast %cst_44 : f32 to vector<8x128xf32>
    %118 = arith.maximumf %116, %117 : vector<8x128xf32>
    %119 = arith.mulf %113, %118 : vector<8x128xf32>
    %120 = arith.subf %80, %78 : vector<8x128xf32>
    %121 = arith.subf %81, %79 : vector<8x128xf32>
    %122 = arith.mulf %120, %121 : vector<8x128xf32>
    %123 = arith.addf %122, %108 : vector<8x128xf32>
    %124 = arith.subf %123, %119 : vector<8x128xf32>
    %cst_45 = arith.constant 1.000000e+00 : f32
    %125 = vector.broadcast %cst_45 : f32 to vector<8x128xf32>
    %126 = arith.select %7, %124, %125 : vector<8x128xi1>, vector<8x128xf32>
    %127 = arith.divf %119, %126 : vector<8x128xf32>
    %128 = arith.minimumf %92, %104 : vector<8x128xf32>
    %129 = arith.maximumf %90, %102 : vector<8x128xf32>
    %130 = arith.subf %128, %129 : vector<8x128xf32>
    %cst_46 = arith.constant 0.000000e+00 : f32
    %131 = vector.broadcast %cst_46 : f32 to vector<8x128xf32>
    %132 = arith.maximumf %130, %131 : vector<8x128xf32>
    %133 = arith.minimumf %93, %105 : vector<8x128xf32>
    %134 = arith.maximumf %91, %103 : vector<8x128xf32>
    %135 = arith.subf %133, %134 : vector<8x128xf32>
    %cst_47 = arith.constant 0.000000e+00 : f32
    %136 = vector.broadcast %cst_47 : f32 to vector<8x128xf32>
    %137 = arith.maximumf %135, %136 : vector<8x128xf32>
    %138 = arith.mulf %132, %137 : vector<8x128xf32>
    %139 = arith.subf %92, %90 : vector<8x128xf32>
    %140 = arith.subf %93, %91 : vector<8x128xf32>
    %141 = arith.mulf %139, %140 : vector<8x128xf32>
    %142 = arith.addf %141, %108 : vector<8x128xf32>
    %143 = arith.subf %142, %138 : vector<8x128xf32>
    %cst_48 = arith.constant 1.000000e+00 : f32
    %144 = vector.broadcast %cst_48 : f32 to vector<8x128xf32>
    %145 = arith.select %7, %143, %144 : vector<8x128xi1>, vector<8x128xf32>
    %146 = arith.divf %138, %145 : vector<8x128xf32>
    %147 = arith.cmpf oge, %127, %146 : vector<8x128xf32>
    %148 = arith.maximumf %127, %146 : vector<8x128xf32>
    %149 = arith.select %147, %24, %36 : vector<8x128xi1>, vector<8x128xf32>
    %150 = arith.select %147, %27, %39 : vector<8x128xi1>, vector<8x128xf32>
    %151 = arith.select %147, %30, %42 : vector<8x128xi1>, vector<8x128xf32>
    %152 = arith.select %147, %33, %45 : vector<8x128xi1>, vector<8x128xf32>
    %153 = arith.select %147, %10, %13 : vector<8x128xi1>, vector<8x128xf32>
    %154 = arith.select %147, %13, %10 : vector<8x128xi1>, vector<8x128xf32>
    %155 = arith.select %147, %48, %60 : vector<8x128xi1>, vector<8x128xf32>
    %156 = arith.select %147, %51, %63 : vector<8x128xi1>, vector<8x128xf32>
    %157 = arith.select %147, %54, %66 : vector<8x128xi1>, vector<8x128xf32>
    %158 = arith.select %147, %57, %69 : vector<8x128xi1>, vector<8x128xf32>
    %159 = arith.subf %153, %148 : vector<8x128xf32>
    %160 = arith.mulf %159, %159 : vector<8x128xf32>
    %cst_49 = arith.constant 1.000000e+00 : f32
    %161 = vector.broadcast %cst_49 : f32 to vector<8x128xf32>
    %162 = arith.select %7, %151, %161 : vector<8x128xi1>, vector<8x128xf32>
    %163 = math.sqrt %162 : vector<8x128xf32>
    %cst_50 = arith.constant 1.000000e+00 : f32
    %164 = vector.broadcast %cst_50 : f32 to vector<8x128xf32>
    %165 = arith.select %7, %152, %164 : vector<8x128xi1>, vector<8x128xf32>
    %166 = math.sqrt %165 : vector<8x128xf32>
    %cst_51 = arith.constant 1.000000e+00 : f32
    %167 = vector.broadcast %cst_51 : f32 to vector<8x128xf32>
    %168 = arith.select %7, %157, %167 : vector<8x128xi1>, vector<8x128xf32>
    %169 = math.sqrt %168 : vector<8x128xf32>
    %cst_52 = arith.constant 1.000000e+00 : f32
    %170 = vector.broadcast %cst_52 : f32 to vector<8x128xf32>
    %171 = arith.select %7, %158, %170 : vector<8x128xi1>, vector<8x128xf32>
    %172 = math.sqrt %171 : vector<8x128xf32>
    %173 = arith.subf %149, %155 : vector<8x128xf32>
    %174 = arith.mulf %173, %173 : vector<8x128xf32>
    %175 = arith.subf %150, %156 : vector<8x128xf32>
    %176 = arith.mulf %175, %175 : vector<8x128xf32>
    %177 = arith.addf %174, %176 : vector<8x128xf32>
    %178 = arith.subf %163, %169 : vector<8x128xf32>
    %179 = arith.mulf %178, %178 : vector<8x128xf32>
    %180 = arith.addf %177, %179 : vector<8x128xf32>
    %181 = arith.subf %166, %172 : vector<8x128xf32>
    %182 = arith.mulf %181, %181 : vector<8x128xf32>
    %183 = arith.addf %180, %182 : vector<8x128xf32>
    %184 = arith.mulf %154, %154 : vector<8x128xf32>
    %cst_53 = arith.constant 0.000000e+00 : f32
    %185 = vector.broadcast %cst_53 : f32 to vector<8x128xf32>
    %c10 = arith.constant 10 : index
    %186 = arith.index_cast %2 : i32 to index
    %c0_54 = arith.constant 0 : index
    %187 = vector.load %arg1[%c10, %186, %c0_54] : memref<30x8x128xf32, #tpu.memory_space<vmem>>, vector<1x8x128xf32>
    %188 = vector.shape_cast %187 : vector<1x8x128xf32> to vector<8x128xf32>
    %c10_55 = arith.constant 10 : index
    %189 = arith.index_cast %2 : i32 to index
    %c0_56 = arith.constant 0 : index
    %190 = vector.load %arg2[%c10_55, %189, %c0_56] : memref<30x8x128xf32, #tpu.memory_space<vmem>>, vector<1x8x128xf32>
    %191 = vector.shape_cast %190 : vector<1x8x128xf32> to vector<8x128xf32>
    %192 = arith.subf %188, %191 : vector<8x128xf32>
    %193 = arith.mulf %192, %192 : vector<8x128xf32>
    %194 = arith.addf %185, %193 : vector<8x128xf32>
    %c11 = arith.constant 11 : index
    %195 = arith.index_cast %2 : i32 to index
    %c0_57 = arith.constant 0 : index
    %196 = vector.load %arg1[%c11, %195, %c0_57] : memref<30x8x128xf32, #tpu.memory_space<vmem>>, vector<1x8x128xf32>
    %197 = vector.shape_cast %196 : vector<1x8x128xf32> to vector<8x128xf32>
    %c11_58 = arith.constant 11 : index
    %198 = arith.index_cast %2 : i32 to index
    %c0_59 = arith.constant 0 : index
    %199 = vector.load %arg2[%c11_58, %198, %c0_59] : memref<30x8x128xf32, #tpu.memory_space<vmem>>, vector<1x8x128xf32>
    %200 = vector.shape_cast %199 : vector<1x8x128xf32> to vector<8x128xf32>
    %201 = arith.subf %197, %200 : vector<8x128xf32>
    %202 = arith.mulf %201, %201 : vector<8x128xf32>
    %203 = arith.addf %194, %202 : vector<8x128xf32>
    %c12 = arith.constant 12 : index
    %204 = arith.index_cast %2 : i32 to index
    %c0_60 = arith.constant 0 : index
    %205 = vector.load %arg1[%c12, %204, %c0_60] : memref<30x8x128xf32, #tpu.memory_space<vmem>>, vector<1x8x128xf32>
    %206 = vector.shape_cast %205 : vector<1x8x128xf32> to vector<8x128xf32>
    %c12_61 = arith.constant 12 : index
    %207 = arith.index_cast %2 : i32 to index
    %c0_62 = arith.constant 0 : index
    %208 = vector.load %arg2[%c12_61, %207, %c0_62] : memref<30x8x128xf32, #tpu.memory_space<vmem>>, vector<1x8x128xf32>
    %209 = vector.shape_cast %208 : vector<1x8x128xf32> to vector<8x128xf32>
    %210 = arith.subf %206, %209 : vector<8x128xf32>
    %211 = arith.mulf %210, %210 : vector<8x128xf32>
    %212 = arith.addf %203, %211 : vector<8x128xf32>
    %c13 = arith.constant 13 : index
    %213 = arith.index_cast %2 : i32 to index
    %c0_63 = arith.constant 0 : index
    %214 = vector.load %arg1[%c13, %213, %c0_63] : memref<30x8x128xf32, #tpu.memory_space<vmem>>, vector<1x8x128xf32>
    %215 = vector.shape_cast %214 : vector<1x8x128xf32> to vector<8x128xf32>
    %c13_64 = arith.constant 13 : index
    %216 = arith.index_cast %2 : i32 to index
    %c0_65 = arith.constant 0 : index
    %217 = vector.load %arg2[%c13_64, %216, %c0_65] : memref<30x8x128xf32, #tpu.memory_space<vmem>>, vector<1x8x128xf32>
    %218 = vector.shape_cast %217 : vector<1x8x128xf32> to vector<8x128xf32>
    %219 = arith.subf %215, %218 : vector<8x128xf32>
    %220 = arith.mulf %219, %219 : vector<8x128xf32>
    %221 = arith.addf %212, %220 : vector<8x128xf32>
    %c14 = arith.constant 14 : index
    %222 = arith.index_cast %2 : i32 to index
    %c0_66 = arith.constant 0 : index
    %223 = vector.load %arg1[%c14, %222, %c0_66] : memref<30x8x128xf32, #tpu.memory_space<vmem>>, vector<1x8x128xf32>
    %224 = vector.shape_cast %223 : vector<1x8x128xf32> to vector<8x128xf32>
    %c14_67 = arith.constant 14 : index
    %225 = arith.index_cast %2 : i32 to index
    %c0_68 = arith.constant 0 : index
    %226 = vector.load %arg2[%c14_67, %225, %c0_68] : memref<30x8x128xf32, #tpu.memory_space<vmem>>, vector<1x8x128xf32>
    %227 = vector.shape_cast %226 : vector<1x8x128xf32> to vector<8x128xf32>
    %228 = arith.subf %224, %227 : vector<8x128xf32>
    %229 = arith.mulf %228, %228 : vector<8x128xf32>
    %230 = arith.addf %221, %229 : vector<8x128xf32>
    %c15 = arith.constant 15 : index
    %231 = arith.index_cast %2 : i32 to index
    %c0_69 = arith.constant 0 : index
    %232 = vector.load %arg1[%c15, %231, %c0_69] : memref<30x8x128xf32, #tpu.memory_space<vmem>>, vector<1x8x128xf32>
    %233 = vector.shape_cast %232 : vector<1x8x128xf32> to vector<8x128xf32>
    %c15_70 = arith.constant 15 : index
    %234 = arith.index_cast %2 : i32 to index
    %c0_71 = arith.constant 0 : index
    %235 = vector.load %arg2[%c15_70, %234, %c0_71] : memref<30x8x128xf32, #tpu.memory_space<vmem>>, vector<1x8x128xf32>
    %236 = vector.shape_cast %235 : vector<1x8x128xf32> to vector<8x128xf32>
    %237 = arith.subf %233, %236 : vector<8x128xf32>
    %238 = arith.mulf %237, %237 : vector<8x128xf32>
    %239 = arith.addf %230, %238 : vector<8x128xf32>
    %c16 = arith.constant 16 : index
    %240 = arith.index_cast %2 : i32 to index
    %c0_72 = arith.constant 0 : index
    %241 = vector.load %arg1[%c16, %240, %c0_72] : memref<30x8x128xf32, #tpu.memory_space<vmem>>, vector<1x8x128xf32>
    %242 = vector.shape_cast %241 : vector<1x8x128xf32> to vector<8x128xf32>
    %c16_73 = arith.constant 16 : index
    %243 = arith.index_cast %2 : i32 to index
    %c0_74 = arith.constant 0 : index
    %244 = vector.load %arg2[%c16_73, %243, %c0_74] : memref<30x8x128xf32, #tpu.memory_space<vmem>>, vector<1x8x128xf32>
    %245 = vector.shape_cast %244 : vector<1x8x128xf32> to vector<8x128xf32>
    %246 = arith.subf %242, %245 : vector<8x128xf32>
    %247 = arith.mulf %246, %246 : vector<8x128xf32>
    %248 = arith.addf %239, %247 : vector<8x128xf32>
    %c17 = arith.constant 17 : index
    %249 = arith.index_cast %2 : i32 to index
    %c0_75 = arith.constant 0 : index
    %250 = vector.load %arg1[%c17, %249, %c0_75] : memref<30x8x128xf32, #tpu.memory_space<vmem>>, vector<1x8x128xf32>
    %251 = vector.shape_cast %250 : vector<1x8x128xf32> to vector<8x128xf32>
    %c17_76 = arith.constant 17 : index
    %252 = arith.index_cast %2 : i32 to index
    %c0_77 = arith.constant 0 : index
    %253 = vector.load %arg2[%c17_76, %252, %c0_77] : memref<30x8x128xf32, #tpu.memory_space<vmem>>, vector<1x8x128xf32>
    %254 = vector.shape_cast %253 : vector<1x8x128xf32> to vector<8x128xf32>
    %255 = arith.subf %251, %254 : vector<8x128xf32>
    %256 = arith.mulf %255, %255 : vector<8x128xf32>
    %257 = arith.addf %248, %256 : vector<8x128xf32>
    %c18 = arith.constant 18 : index
    %258 = arith.index_cast %2 : i32 to index
    %c0_78 = arith.constant 0 : index
    %259 = vector.load %arg1[%c18, %258, %c0_78] : memref<30x8x128xf32, #tpu.memory_space<vmem>>, vector<1x8x128xf32>
    %260 = vector.shape_cast %259 : vector<1x8x128xf32> to vector<8x128xf32>
    %c18_79 = arith.constant 18 : index
    %261 = arith.index_cast %2 : i32 to index
    %c0_80 = arith.constant 0 : index
    %262 = vector.load %arg2[%c18_79, %261, %c0_80] : memref<30x8x128xf32, #tpu.memory_space<vmem>>, vector<1x8x128xf32>
    %263 = vector.shape_cast %262 : vector<1x8x128xf32> to vector<8x128xf32>
    %264 = arith.subf %260, %263 : vector<8x128xf32>
    %265 = arith.mulf %264, %264 : vector<8x128xf32>
    %266 = arith.addf %257, %265 : vector<8x128xf32>
    %c19 = arith.constant 19 : index
    %267 = arith.index_cast %2 : i32 to index
    %c0_81 = arith.constant 0 : index
    %268 = vector.load %arg1[%c19, %267, %c0_81] : memref<30x8x128xf32, #tpu.memory_space<vmem>>, vector<1x8x128xf32>
    %269 = vector.shape_cast %268 : vector<1x8x128xf32> to vector<8x128xf32>
    %c19_82 = arith.constant 19 : index
    %270 = arith.index_cast %2 : i32 to index
    %c0_83 = arith.constant 0 : index
    %271 = vector.load %arg2[%c19_82, %270, %c0_83] : memref<30x8x128xf32, #tpu.memory_space<vmem>>, vector<1x8x128xf32>
    %272 = vector.shape_cast %271 : vector<1x8x128xf32> to vector<8x128xf32>
    %273 = arith.subf %269, %272 : vector<8x128xf32>
    %274 = arith.mulf %273, %273 : vector<8x128xf32>
    %275 = arith.addf %266, %274 : vector<8x128xf32>
    %c20 = arith.constant 20 : index
    %276 = arith.index_cast %2 : i32 to index
    %c0_84 = arith.constant 0 : index
    %277 = vector.load %arg1[%c20, %276, %c0_84] : memref<30x8x128xf32, #tpu.memory_space<vmem>>, vector<1x8x128xf32>
    %278 = vector.shape_cast %277 : vector<1x8x128xf32> to vector<8x128xf32>
    %c20_85 = arith.constant 20 : index
    %279 = arith.index_cast %2 : i32 to index
    %c0_86 = arith.constant 0 : index
    %280 = vector.load %arg2[%c20_85, %279, %c0_86] : memref<30x8x128xf32, #tpu.memory_space<vmem>>, vector<1x8x128xf32>
    %281 = vector.shape_cast %280 : vector<1x8x128xf32> to vector<8x128xf32>
    %282 = arith.subf %278, %281 : vector<8x128xf32>
    %283 = arith.mulf %282, %282 : vector<8x128xf32>
    %284 = arith.addf %275, %283 : vector<8x128xf32>
    %c21 = arith.constant 21 : index
    %285 = arith.index_cast %2 : i32 to index
    %c0_87 = arith.constant 0 : index
    %286 = vector.load %arg1[%c21, %285, %c0_87] : memref<30x8x128xf32, #tpu.memory_space<vmem>>, vector<1x8x128xf32>
    %287 = vector.shape_cast %286 : vector<1x8x128xf32> to vector<8x128xf32>
    %c21_88 = arith.constant 21 : index
    %288 = arith.index_cast %2 : i32 to index
    %c0_89 = arith.constant 0 : index
    %289 = vector.load %arg2[%c21_88, %288, %c0_89] : memref<30x8x128xf32, #tpu.memory_space<vmem>>, vector<1x8x128xf32>
    %290 = vector.shape_cast %289 : vector<1x8x128xf32> to vector<8x128xf32>
    %291 = arith.subf %287, %290 : vector<8x128xf32>
    %292 = arith.mulf %291, %291 : vector<8x128xf32>
    %293 = arith.addf %284, %292 : vector<8x128xf32>
    %c22 = arith.constant 22 : index
    %294 = arith.index_cast %2 : i32 to index
    %c0_90 = arith.constant 0 : index
    %295 = vector.load %arg1[%c22, %294, %c0_90] : memref<30x8x128xf32, #tpu.memory_space<vmem>>, vector<1x8x128xf32>
    %296 = vector.shape_cast %295 : vector<1x8x128xf32> to vector<8x128xf32>
    %c22_91 = arith.constant 22 : index
    %297 = arith.index_cast %2 : i32 to index
    %c0_92 = arith.constant 0 : index
    %298 = vector.load %arg2[%c22_91, %297, %c0_92] : memref<30x8x128xf32, #tpu.memory_space<vmem>>, vector<1x8x128xf32>
    %299 = vector.shape_cast %298 : vector<1x8x128xf32> to vector<8x128xf32>
    %300 = arith.subf %296, %299 : vector<8x128xf32>
    %301 = arith.mulf %300, %300 : vector<8x128xf32>
    %302 = arith.addf %293, %301 : vector<8x128xf32>
    %c23 = arith.constant 23 : index
    %303 = arith.index_cast %2 : i32 to index
    %c0_93 = arith.constant 0 : index
    %304 = vector.load %arg1[%c23, %303, %c0_93] : memref<30x8x128xf32, #tpu.memory_space<vmem>>, vector<1x8x128xf32>
    %305 = vector.shape_cast %304 : vector<1x8x128xf32> to vector<8x128xf32>
    %c23_94 = arith.constant 23 : index
    %306 = arith.index_cast %2 : i32 to index
    %c0_95 = arith.constant 0 : index
    %307 = vector.load %arg2[%c23_94, %306, %c0_95] : memref<30x8x128xf32, #tpu.memory_space<vmem>>, vector<1x8x128xf32>
    %308 = vector.shape_cast %307 : vector<1x8x128xf32> to vector<8x128xf32>
    %309 = arith.subf %305, %308 : vector<8x128xf32>
    %310 = arith.mulf %309, %309 : vector<8x128xf32>
    %311 = arith.addf %302, %310 : vector<8x128xf32>
    %c24 = arith.constant 24 : index
    %312 = arith.index_cast %2 : i32 to index
    %c0_96 = arith.constant 0 : index
    %313 = vector.load %arg1[%c24, %312, %c0_96] : memref<30x8x128xf32, #tpu.memory_space<vmem>>, vector<1x8x128xf32>
    %314 = vector.shape_cast %313 : vector<1x8x128xf32> to vector<8x128xf32>
    %c24_97 = arith.constant 24 : index
    %315 = arith.index_cast %2 : i32 to index
    %c0_98 = arith.constant 0 : index
    %316 = vector.load %arg2[%c24_97, %315, %c0_98] : memref<30x8x128xf32, #tpu.memory_space<vmem>>, vector<1x8x128xf32>
    %317 = vector.shape_cast %316 : vector<1x8x128xf32> to vector<8x128xf32>
    %318 = arith.subf %314, %317 : vector<8x128xf32>
    %319 = arith.mulf %318, %318 : vector<8x128xf32>
    %320 = arith.addf %311, %319 : vector<8x128xf32>
    %c25 = arith.constant 25 : index
    %321 = arith.index_cast %2 : i32 to index
    %c0_99 = arith.constant 0 : index
    %322 = vector.load %arg1[%c25, %321, %c0_99] : memref<30x8x128xf32, #tpu.memory_space<vmem>>, vector<1x8x128xf32>
    %323 = vector.shape_cast %322 : vector<1x8x128xf32> to vector<8x128xf32>
    %c25_100 = arith.constant 25 : index
    %324 = arith.index_cast %2 : i32 to index
    %c0_101 = arith.constant 0 : index
    %325 = vector.load %arg2[%c25_100, %324, %c0_101] : memref<30x8x128xf32, #tpu.memory_space<vmem>>, vector<1x8x128xf32>
    %326 = vector.shape_cast %325 : vector<1x8x128xf32> to vector<8x128xf32>
    %327 = arith.subf %323, %326 : vector<8x128xf32>
    %328 = arith.mulf %327, %327 : vector<8x128xf32>
    %329 = arith.addf %320, %328 : vector<8x128xf32>
    %c26 = arith.constant 26 : index
    %330 = arith.index_cast %2 : i32 to index
    %c0_102 = arith.constant 0 : index
    %331 = vector.load %arg1[%c26, %330, %c0_102] : memref<30x8x128xf32, #tpu.memory_space<vmem>>, vector<1x8x128xf32>
    %332 = vector.shape_cast %331 : vector<1x8x128xf32> to vector<8x128xf32>
    %c26_103 = arith.constant 26 : index
    %333 = arith.index_cast %2 : i32 to index
    %c0_104 = arith.constant 0 : index
    %334 = vector.load %arg2[%c26_103, %333, %c0_104] : memref<30x8x128xf32, #tpu.memory_space<vmem>>, vector<1x8x128xf32>
    %335 = vector.shape_cast %334 : vector<1x8x128xf32> to vector<8x128xf32>
    %336 = arith.subf %332, %335 : vector<8x128xf32>
    %337 = arith.mulf %336, %336 : vector<8x128xf32>
    %338 = arith.addf %329, %337 : vector<8x128xf32>
    %c27 = arith.constant 27 : index
    %339 = arith.index_cast %2 : i32 to index
    %c0_105 = arith.constant 0 : index
    %340 = vector.load %arg1[%c27, %339, %c0_105] : memref<30x8x128xf32, #tpu.memory_space<vmem>>, vector<1x8x128xf32>
    %341 = vector.shape_cast %340 : vector<1x8x128xf32> to vector<8x128xf32>
    %c27_106 = arith.constant 27 : index
    %342 = arith.index_cast %2 : i32 to index
    %c0_107 = arith.constant 0 : index
    %343 = vector.load %arg2[%c27_106, %342, %c0_107] : memref<30x8x128xf32, #tpu.memory_space<vmem>>, vector<1x8x128xf32>
    %344 = vector.shape_cast %343 : vector<1x8x128xf32> to vector<8x128xf32>
    %345 = arith.subf %341, %344 : vector<8x128xf32>
    %346 = arith.mulf %345, %345 : vector<8x128xf32>
    %347 = arith.addf %338, %346 : vector<8x128xf32>
    %c28 = arith.constant 28 : index
    %348 = arith.index_cast %2 : i32 to index
    %c0_108 = arith.constant 0 : index
    %349 = vector.load %arg1[%c28, %348, %c0_108] : memref<30x8x128xf32, #tpu.memory_space<vmem>>, vector<1x8x128xf32>
    %350 = vector.shape_cast %349 : vector<1x8x128xf32> to vector<8x128xf32>
    %c28_109 = arith.constant 28 : index
    %351 = arith.index_cast %2 : i32 to index
    %c0_110 = arith.constant 0 : index
    %352 = vector.load %arg2[%c28_109, %351, %c0_110] : memref<30x8x128xf32, #tpu.memory_space<vmem>>, vector<1x8x128xf32>
    %353 = vector.shape_cast %352 : vector<1x8x128xf32> to vector<8x128xf32>
    %354 = arith.subf %350, %353 : vector<8x128xf32>
    %355 = arith.mulf %354, %354 : vector<8x128xf32>
    %356 = arith.addf %347, %355 : vector<8x128xf32>
    %c29 = arith.constant 29 : index
    %357 = arith.index_cast %2 : i32 to index
    %c0_111 = arith.constant 0 : index
    %358 = vector.load %arg1[%c29, %357, %c0_111] : memref<30x8x128xf32, #tpu.memory_space<vmem>>, vector<1x8x128xf32>
    %359 = vector.shape_cast %358 : vector<1x8x128xf32> to vector<8x128xf32>
    %c29_112 = arith.constant 29 : index
    %360 = arith.index_cast %2 : i32 to index
    %c0_113 = arith.constant 0 : index
    %361 = vector.load %arg2[%c29_112, %360, %c0_113] : memref<30x8x128xf32, #tpu.memory_space<vmem>>, vector<1x8x128xf32>
    %362 = vector.shape_cast %361 : vector<1x8x128xf32> to vector<8x128xf32>
    %363 = arith.subf %359, %362 : vector<8x128xf32>
    %364 = arith.mulf %363, %363 : vector<8x128xf32>
    %365 = arith.addf %356, %364 : vector<8x128xf32>
    %cst_114 = arith.constant 5.000000e+00 : f32
    %366 = vector.broadcast %cst_114 : f32 to vector<8x128xf32>
    %367 = arith.mulf %366, %183 : vector<8x128xf32>
    %cst_115 = arith.constant 2.000000e+00 : f32
    %368 = vector.broadcast %cst_115 : f32 to vector<8x128xf32>
    %369 = arith.mulf %368, %160 : vector<8x128xf32>
    %370 = arith.addf %367, %369 : vector<8x128xf32>
    %371 = arith.addf %370, %184 : vector<8x128xf32>
    %372 = arith.addf %371, %365 : vector<8x128xf32>
    %cst_116 = arith.constant 5.000000e-01 : f32
    %373 = vector.broadcast %cst_116 : f32 to vector<8x128xf32>
    %374 = arith.mulf %373, %21 : vector<8x128xf32>
    %375 = arith.select %7, %372, %374 : vector<8x128xi1>, vector<8x128xf32>
    %376 = arith.addf %0, %375 : vector<8x128xf32>
    %c1_i32 = arith.constant 1 : i32
    %377 = vector.shape_cast %376 : vector<8x128xf32> to vector<1x8x128xf32>
    %cst_117 = arith.constant dense<0.000000e+00> : vector<1xf32>
    %378 = vector.multi_reduction <add>, %377, %cst_117 [1, 2] : vector<1x8x128xf32> to vector<1xf32>
    %379 = vector.shape_cast %378 : vector<1xf32> to vector<1x1x1xf32>
    %380 = vector.extract %379[0, 0, 0] : f32 from vector<1x1x1xf32>
    %cst_118 = arith.constant 5.000000e-01 : f32
    %381 = arith.mulf %380, %cst_118 : f32
    %c0_119 = arith.constant 0 : index
    %c0_120 = arith.constant 0 : index
    %382 = memref.load %arg3[%c0_119, %c0_120] : memref<1x1xf32, #tpu.memory_space<smem>>
    memref.store %381, %arg3[%c0_119, %c0_120] : memref<1x1xf32, #tpu.memory_space<smem>>
    return
  }
  func.func @transform_0(%arg0: i32) -> (i32, i32, i32) {
    %c0_i32 = arith.constant 0 : i32
    %c0_i32_0 = arith.constant 0 : i32
    %c0_i32_1 = arith.constant 0 : i32
    return %c0_i32, %arg0, %c0_i32_0 : i32, i32, i32
  }
  func.func @transform_1(%arg0: i32) -> (i32, i32, i32) {
    %c0_i32 = arith.constant 0 : i32
    %c0_i32_0 = arith.constant 0 : i32
    %c0_i32_1 = arith.constant 0 : i32
    return %c0_i32, %arg0, %c0_i32_0 : i32, i32, i32
  }
  func.func @transform_2(%arg0: i32) -> (i32, i32) {
    %c0_i32 = arith.constant 0 : i32
    %c0_i32_0 = arith.constant 0 : i32
    return %arg0, %c0_i32 : i32, i32
  }
}

</mosaic_0001>

<bundles_post_ra>
// kernel: tpu_custom_call.1
= control target key start
LH: loop header
LB: loop body
LE: loop exit
PB: predicated region body
PF: predicated region fallthrough
CT: control target
= control target key end

     0   :  { %7 = vsyncpa [#allocation3], 0  ;;  %s752_s0 = inlined_call_operand.hbm [shape: f32[30,8,128], index: 0, kind: input, shape index: {}]   ;;  %s753_s1 = inlined_call_operand.hbm [shape: f32[30,8,128], index: 1, kind: input, shape index: {}]   ;;  %s754_s2 = inlined_call_operand.hbm [shape: f32[1,1], index: 2, kind: output, shape index: {}]  }
   0x1   :  { %8 = vsyncpa [#allocation6], 0 }
   0x2   :  { %9 = vsyncpa [#allocation4], 0  ;;  %s544_s9 = smov [#allocation2]   ;;  %s484_s13 = scalar_lea.hbm %s752_s0, 3840 }
   0x3   :  { %s15_s10 = sshll.u32 %s544_s9, 4  ;;  %p485_p0 = scmp.ne.s32.totalorder %s752_s0, %s484_s13  ;;  %s16_s10 = int_to_ptr.vmem [resolvable:$true] %s15_s10 }
   0x4   :  { %p488_p1 = scmp.lt.u32.totalorder %s484_s13, %s752_s0 }
   0x6   :  { %p490_p2 = pnand %p488_p1, %p485_p0 }
   0x8   :  { %493 = shalt.err (!%p490_p2)
}
   0x9   :  { %s494_s18 = scalar_lea.vmem %s16_s10, 3840  ;;  %p499_p4 = scmp.lt.s32.totalorder %s16_s10, %s16_s10 }
   0xa   :  { %p495_p3 = scmp.ne.s32.totalorder %s16_s10, %s494_s18  ;;  %p500_p5 = scmp.lt.s32.totalorder %s494_s18, %s494_s18 }
   0xc   :  { %p501_p6 = por %p500_p5, %p499_p4 }
   0xe   :  { %p502_p7 = pnand %p501_p6, %p495_p3 }
  0x10   :  { %505 = shalt.err (!%p502_p7)
}
  0x11   :  { %s545_s19 = smov 128   ;;  %s546_s20 = smov 8  }
  0x12   :  { %21 = dma.hbm_to_vmem [thread:$0]  %s752_s0, 3840, %s16_s10, [#allocation3], %s545_s19, %s545_s19, %s546_s20  }
  0x13   :  { %s547_s23 = smov [#allocation5]   ;;  %s506_s27 = scalar_lea.hbm %s753_s1, 3840 }
  0x14   :  { %s27_s24 = sshll.u32 %s547_s23, 4  ;;  %p507_p8 = scmp.ne.s32.totalorder %s753_s1, %s506_s27  ;;  %s28_s24 = int_to_ptr.vmem [resolvable:$true] %s27_s24 }
  0x15   :  { %p510_p9 = scmp.lt.u32.totalorder %s506_s27, %s753_s1 }
  0x17   :  { %p512_p10 = pnand %p510_p9, %p507_p8 }
  0x19   :  { %515 = shalt.err (!%p512_p10)
}
  0x1a   :  { %s516_s4 = scalar_lea.vmem %s28_s24, 3840  ;;  %p521_p12 = scmp.lt.s32.totalorder %s28_s24, %s28_s24 }
  0x1b   :  { %p517_p11 = scmp.ne.s32.totalorder %s28_s24, %s516_s4  ;;  %p522_p13 = scmp.lt.s32.totalorder %s516_s4, %s516_s4 }
  0x1d   :  { %p523_p0 = por %p522_p13, %p521_p12 }
  0x1f   :  { %p524_p1 = pnand %p523_p0, %p517_p11 }
  0x21   :  { %527 = shalt.err (!%p524_p1)
}
  0x22   :  { %33 = dma.hbm_to_vmem [thread:$0]  %s753_s1, 3840, %s28_s24, [#allocation6], %s545_s19, %s545_s19, %s546_s20  }
  0x23   :  { %538 = dma.done.wait [#allocation3], 3840  }
  0x24   :  { %539 = vsyncadd [#allocation3], 4294963456 }
  0x25   :  { %540 = dma.done.wait [#allocation6], 3840  }
  0x26   :  { %541 = vsyncadd [#allocation6], 4294963456  ;;  %v588_v0 = vld [vmem:[#allocation2] sm:$0xff]  ;;  %v590_v1 = vld [vmem:[#allocation2 + $0x8] sm:$0xff]  ;;  %s528_s9 = scalar_lea.hbm %s754_s2, 16 }
  0x27   :  { %v592_v2 = vld [vmem:[#allocation2 + $0x10] sm:$0xff]  ;;  %v594_v3 = vld [vmem:[#allocation2 + $0x18] sm:$0xff]  ;;  %v596_v4 = vld [vmem:[#allocation2 + $0x28] sm:$0xff]  ;;  %v93_v5 = vmul.f32 0.14285715, %v588_v0  ;;  %p529_p2 = scmp.ne.s32.totalorder %s754_s2, %s528_s9  ;;  %p532_p3 = scmp.lt.u32.totalorder %s528_s9, %s754_s2 }
  0x28   :  { %v599_v6 = vld [vmem:[#allocation2 + $0x30] sm:$0xff]  ;;  %v601_v7 = vld [vmem:[#allocation2 + $0x38] sm:$0xff]  ;;  %v603_v8 = vld [vmem:[#allocation2 + $0x40] sm:$0xff]  ;;  %v94_v9 = vmul.f32 0.14285715, %v590_v1  ;;  %v95_v10 = vmul.f32 0.5, %v592_v2 }
  0x29   :  { %v607_v11 = vld [vmem:[#allocation5] sm:$0xff]  ;;  %v609_v12 = vld [vmem:[#allocation5 + $0x8] sm:$0xff]  ;;  %v96_v13 = vmul.f32 0.5, %v594_v3  ;;  %v101_v14 = vmul.f32 0.14285715, %v596_v4  ;;  %v613_v15 = vld [vmem:[#allocation5 + $0x10] sm:$0xff]  ;;  %p534_p4 = pnand %p532_p3, %p529_p2 }
  0x2a   :  { %v615_v16 = vld [vmem:[#allocation5 + $0x18] sm:$0xff]  ;;  %v97_v17 = vsub.f32 %v93_v5, %v95_v10  ;;  %v102_v18 = vmul.f32 0.14285715, %v599_v6  ;;  %v103_v19 = vmul.f32 0.5, %v601_v7  ;;  %v99_v21 = vadd.f32 %v95_v10, %v93_v5  ;;  %v214_v24 = vld [vmem:[#allocation2 + $0x50] sm:$0xff]  ;;  %v216_v29 = vld [vmem:[#allocation5 + $0x50] sm:$0xff] }
  0x2b   :  { %v98_v20 = vsub.f32 %v94_v9, %v96_v13  ;;  %v100_v22 = vadd.f32 %v96_v13, %v94_v9  ;;  %v104_v23 = vmul.f32 0.5, %v603_v8  ;;  %v109_v27 = vmul.f32 0.14285715, %v607_v11  ;;  %v222_v34 = vld [vmem:[#allocation2 + $0x58] sm:$0xff]  ;;  %v224_v35 = vld [vmem:[#allocation5 + $0x58] sm:$0xff]  ;;  %v230_v56 = vld [vmem:[#allocation2 + $0x60] sm:$0xff] }
  0x2c   :  { %v105_v25 = vsub.f32 %v101_v14, %v103_v19  ;;  %v107_v26 = vadd.f32 %v103_v19, %v101_v14  ;;  %v110_v28 = vmul.f32 0.14285715, %v609_v12  ;;  %v111_v32 = vmul.f32 0.5, %v613_v15  ;;  %v232_v57 = vld [vmem:[#allocation5 + $0x60] sm:$0xff]  ;;  %v238_v63 = vld [vmem:[#allocation2 + $0x68] sm:$0xff]  ;;  %v240_v5 = vld [vmem:[#allocation5 + $0x68] sm:$0xff] }
  0x2d   :  { %v106_v30 = vsub.f32 %v102_v18, %v104_v23  ;;  %v108_v31 = vadd.f32 %v104_v23, %v102_v18  ;;  %v112_v33 = vmul.f32 0.5, %v615_v16  ;;  %v129_v36 = vsub.f32 %v99_v21, %v97_v17  ;;  %v624_v58 = vld [vmem:[#allocation5 + $0x20] sm:$0xff]  ;;  %v254_v19 = vld [vmem:[#allocation2 + $0x78] sm:$0xff] }
  0x2e   :  { %v130_v37 = vsub.f32 %v100_v22, %v98_v20  ;;  %v146_v38 = vsub.f32 %v107_v26, %v105_v25  ;;  %v217_v39 = vsub.f32 %v214_v24, %v216_v29  ;;  %v113_v40 = vsub.f32 %v109_v27, %v111_v32  ;;  %v246_v18 = vld [vmem:[#allocation2 + $0x70] sm:$0xff]  ;;  %v256_v24 = vld [vmem:[#allocation5 + $0x78] sm:$0xff] }
  0x2f   :  { %v114_v41 = vsub.f32 %v110_v28, %v112_v33  ;;  %v115_v42 = vadd.f32 %v111_v32, %v109_v27  ;;  %v116_v43 = vadd.f32 %v112_v33, %v110_v28  ;;  %v147_v45 = vsub.f32 %v108_v31, %v106_v30 }
  0x30   :  { %v131_v44 = vmul.f32 %v130_v37, %v129_v36  ;;  %v218_v46 = vmul.f32 %v217_v39, %v217_v39  ;;  %v225_v47 = vsub.f32 %v222_v34, %v224_v35  ;;  %v121_v51 = vmax.f32 %v97_v17, %v113_v40  ;;  %v248_v17 = vld [vmem:[#allocation5 + $0x70] sm:$0xff]  ;;  %v272_v39 = vld [vmem:[#allocation5 + $0x88] sm:$0xff] }
  0x31   :  { %v117_v48 = vsub.f32 %v115_v42, %v113_v40  ;;  %v118_v49 = vsub.f32 %v116_v43, %v114_v41  ;;  %v120_v50 = vmin.f32 %v99_v21, %v115_v42  ;;  %v124_v52 = vmin.f32 %v100_v22, %v116_v43 }
  0x32   :  { %v125_v53 = vmax.f32 %v98_v20, %v114_v41  ;;  %v137_v54 = vmin.f32 %v107_v26, %v115_v42  ;;  %v138_v55 = vmax.f32 %v105_v25, %v113_v40  ;;  %v141_v61 = vmin.f32 %v108_v31, %v116_v43  ;;  %v262_v25 = vld [vmem:[#allocation2 + $0x80] sm:$0xff]  ;;  %v264_v26 = vld [vmem:[#allocation5 + $0x80] sm:$0xff] }
  0x33   :  { %v119_v59 = vmul.f32 %v118_v49, %v117_v48  ;;  %v122_v60 = vsub.f32 %v120_v50, %v121_v51  ;;  %v142_v62 = vmax.f32 %v106_v30, %v114_v41  ;;  %v148_v13 = vmul.f32 %v147_v45, %v146_v38  ;;  %v270_v38 = vld [vmem:[#allocation2 + $0x88] sm:$0xff]  ;;  %v278_v45 = vld [vmem:[#allocation2 + $0x90] sm:$0xff] }
  0x34   :  { %v126_v9 = vsub.f32 %v124_v52, %v125_v53  ;;  %v139_v10 = vsub.f32 %v137_v54, %v138_v55  ;;  %v226_v14 = vmul.f32 %v225_v47, %v225_v47  ;;  %v233_v23 = vsub.f32 %v230_v56, %v232_v57  ;;  %v280_v47 = vld [vmem:[#allocation5 + $0x90] sm:$0xff]  ;;  %v286_v56 = vld [vmem:[#allocation2 + $0x98] sm:$0xff]  ;;  %v288_v57 = vld [vmem:[#allocation5 + $0x98] sm:$0xff] }
  0x35   :  { %v123_v20 = vmax.f32 %v122_v60, 0.0  ;;  %v132_v21 = vadd.f32 %v131_v44, %v119_v59  ;;  %v143_v22 = vsub.f32 %v141_v61, %v142_v62  ;;  %v149_v29 = vadd.f32 %v148_v13, %v119_v59 }
  0x36   :  { %v127_v27 = vmax.f32 %v126_v9, 0.0  ;;  %v140_v28 = vmax.f32 %v139_v10, 0.0  ;;  %v227_v30 = vadd.f32 %v226_v14, %v218_v46  ;;  %v234_v32 = vmul.f32 %v233_v23, %v233_v23  ;;  %v296_v9 = vld [vmem:[#allocation5 + $0xa0] sm:$0xff] }
  0x37   :  { %v144_v31 = vmax.f32 %v143_v22, 0.0  ;;  %v241_v33 = vsub.f32 %v238_v63, %v240_v5  ;;  %v249_v34 = vsub.f32 %v246_v18, %v248_v17  ;;  %vm43_vm0 = vcmp.gt.f32.partialorder %v624_v58, 0.0  ;;  %v294_v5 = vld [vmem:[#allocation2 + $0xa0] sm:$0xff]  ;;  %v302_v17 = vld [vmem:[#allocation2 + $0xa8] sm:$0xff] }
  0x38   :  { %v128_v35 = vmul.f32 %v127_v27, %v123_v20  ;;  %v257_v36 = vsub.f32 %v254_v19, %v256_v24  ;;  %v265_v37 = vsub.f32 %v262_v25, %v264_v26  ;;  %v235_v41 = vadd.f32 %v234_v32, %v227_v30  ;;  %v304_v19 = vld [vmem:[#allocation5 + $0xa8] sm:$0xff]  ;;  %v310_v26 = vld [vmem:[#allocation2 + $0xb0] sm:$0xff]  ;;  %v312_v27 = vld [vmem:[#allocation5 + $0xb0] sm:$0xff] }
  0x39   :  { %v145_v40 = vmul.f32 %v144_v31, %v140_v28  ;;  %v242_v42 = vmul.f32 %v241_v33, %v241_v33  ;;  %v250_v43 = vmul.f32 %v249_v34, %v249_v34  ;;  %v273_v50 = vsub.f32 %v270_v38, %v272_v39  ;;  %v92_v30 = vld [vmem:[#allocation5 + $0x40] sm:$0xff]  ;;  %v318_v33 = vld [vmem:[#allocation2 + $0xb8] sm:$0xff]  ;;  %v320_v34 = vld [vmem:[#allocation5 + $0xb8] sm:$0xff] }
  0x3a   :  { %v133_v44 = vsub.f32 %v132_v21, %v128_v35  ;;  %v258_v49 = vmul.f32 %v257_v36, %v257_v36  ;;  %v266_v52 = vmul.f32 %v265_v37, %v265_v37  ;;  %v281_v55 = vsub.f32 %v278_v45, %v280_v47  ;;  %v326_v38 = vld [vmem:[#allocation2 + $0xc0] sm:$0xff]  ;;  %v328_v39 = vld [vmem:[#allocation5 + $0xc0] sm:$0xff]  ;;  %v334_v45 = vld [vmem:[#allocation2 + $0xc8] sm:$0xff] }
  0x3b   :  { %v150_v48 = vsub.f32 %v149_v29, %v145_v40  ;;  %v243_v46 = vadd.f32 %v242_v42, %v235_v41  ;;  %v274_v60 = vmul.f32 %v273_v50, %v273_v50  ;;  %v289_v61 = vsub.f32 %v286_v56, %v288_v57  ;;  %v90_v29 = vld [vmem:[#allocation5 + $0x38] sm:$0xff]  ;;  %v336_v47 = vld [vmem:[#allocation5 + $0xc8] sm:$0xff] }
  0x3c   :  { %v134_v51 = vsel %vm43_vm0, %v133_v44, 1.0  ;;  %v282_v63 = vmul.f32 %v281_v55, %v281_v55  ;;  %v297_v14 = vsub.f32 %v294_v5, %v296_v9  ;;  %v305_v25 = vsub.f32 %v302_v17, %v304_v19  ;;  %v352_v50 = vld [vmem:[#allocation5 + $0xd8] sm:$0xff] }
  0x3d   :  { %472 = vrcp.f32 %v134_v51  ;;  %v151_v53 = vsel %vm43_vm0, %v150_v48, 1.0  ;;  %v251_v54 = vadd.f32 %v250_v43, %v243_v46  ;;  %v290_v13 = vmul.f32 %v289_v61, %v289_v61  ;;  %v342_v48 = vld [vmem:[#allocation2 + $0xd0] sm:$0xff]  ;;  %v344_v46 = vld [vmem:[#allocation5 + $0xd0] sm:$0xff] }
  0x3e   :  { %474 = vrcp.f32 %v151_v53  ;;  %v298_v24 = vmul.f32 %v297_v14, %v297_v14  ;;  %v313_v32 = vsub.f32 %v310_v26, %v312_v27  ;;  %v306_v37 = vmul.f32 %v305_v25, %v305_v25  ;;  %v88_v53 = vld [vmem:[#allocation5 + $0x30] sm:$0xff]  ;;  %v360_v61 = vld [vmem:[#allocation5 + $0xe0] sm:$0xff] }
  0x3f   :  { %v259_v59 = vadd.f32 %v258_v49, %v251_v54  ;;  %v329_v44 = vsub.f32 %v326_v38, %v328_v39  ;;  %v350_v49 = vld [vmem:[#allocation2 + $0xd8] sm:$0xff]  ;;  %v337_v54 = vsub.f32 %v334_v45, %v336_v47  ;;  %v345_v55 = vsub.f32 %v342_v48, %v344_v46 }
  0x40   :  { %v314_v43 = vmul.f32 %v313_v32, %v313_v32 }
  0x41   :  { %v267_v62 = vadd.f32 %v266_v52, %v259_v59  ;;  %v86_v52 = vld [vmem:[#allocation5 + $0x28] sm:$0xff]  ;;  %v330_v57 = vmul.f32 %v329_v44, %v329_v44  ;;  %v353_v59 = vsub.f32 %v350_v49, %v352_v50  ;;  %v346_v17 = vmul.f32 %v345_v55, %v345_v55 }
  0x43   :  { %v275_v10 = vadd.f32 %v274_v60, %v267_v62  ;;  %v358_v60 = vld [vmem:[#allocation2 + $0xe0] sm:$0xff] }
  0x44   :  { %v675_v62 = vld [vmem:[#allocation2 + $0x20] sm:$0xff]  ;;  %v361_v19 = vsub.f32 %v358_v60, %v360_v61 }
  0x45   :  { %v283_v18 = vadd.f32 %v282_v63, %v275_v10  ;;  %v677_v63 = vld [vmem:[#allocation2 + $0x48] sm:$0xff]  ;;  %v49_v44 = vsub.f32 %v675_v62, %v624_v58 }
  0x47   :  { %v473_v20 = vpop.eup %472  ;;  %v291_v23 = vadd.f32 %v290_v13, %v283_v18  ;;  %v338_v18 = vmul.f32 %v337_v54, %v337_v54  ;;  %v362_v54 = vmul.f32 %v361_v19, %v361_v19 }
  0x48   :  { %v475_v21 = vpop.eup %474  ;;  %v631_v22 = vmul.f32 %v473_v20, %v128_v35 }
  0x49   :  { %v633_v28 = vmul.f32 %v475_v21, %v145_v40  ;;  %v299_v36 = vadd.f32 %v298_v24, %v291_v23 }
  0x4b   :  { %vm637_vm1 = vcmp.ge.f32.partialorder %v631_v22, %v633_v28 }
  0x4c   :  { %v158_v35 = vsel %vm637_vm1, %v592_v2, %v601_v7  ;;  %v159_v40 = vsel %vm637_vm1, %v594_v3, %v603_v8  ;;  %v164_v41 = vsel %vm637_vm1, %v613_v15, %v90_v29  ;;  %v165_v42 = vsel %vm637_vm1, %v615_v16, %v92_v30 }
  0x4d   :  { %v657_v2 = vsel %vm43_vm0, %v158_v35, 1.0  ;;  %v321_v7 = vsub.f32 %v318_v33, %v320_v34  ;;  %v662_v3 = vsel %vm43_vm0, %v159_v40, 1.0  ;;  %v666_v8 = vsel %vm43_vm0, %v164_v41, 1.0 }
  0x4e   :  { %476 = vrsqrt.f32 %v657_v2  ;;  %v670_v15 = vsel %vm43_vm0, %v165_v42, 1.0  ;;  %v307_v16 = vadd.f32 %v306_v37, %v299_v36  ;;  %v156_v5 = vsel %vm637_vm1, %v588_v0, %v596_v4  ;;  %v51_v36 = vld [vmem:[#allocation5 + $0x48] sm:$0xff] }
  0x4f   :  { %478 = vrsqrt.f32 %v662_v3  ;;  %v322_v51 = vmul.f32 %v321_v7, %v321_v7  ;;  %v157_v9 = vsel %vm637_vm1, %v590_v1, %v599_v6  ;;  %v162_v10 = vsel %vm637_vm1, %v607_v11, %v86_v52 }
  0x50   :  { %480 = vrsqrt.f32 %v666_v8  ;;  %v315_v56 = vadd.f32 %v314_v43, %v307_v16  ;;  %v163_v13 = vsel %vm637_vm1, %v609_v12, %v88_v53  ;;  %v155_v0 = vmax.f32 %v631_v22, %v633_v28  ;;  %v366_v43 = vld [vmem:[#allocation2 + $0xe8] sm:$0xff] }
  0x51   :  { %482 = vrsqrt.f32 %v670_v15  ;;  %v160_v1 = vsel %vm637_vm1, %v675_v62, %v677_v63  ;;  %v354_v6 = vmul.f32 %v353_v59, %v353_v59  ;;  %vm171_vm2 = vcmp.eq.f32.partialorder %v657_v2, inf }
  0x52   :  { %v323_v14 = vadd.f32 %v322_v51, %v315_v56  ;;  %vm173_vm3 = vcmp.eq.f32.partialorder %v657_v2, 0.0  ;;  %v200_v11 = vsub.f32 %v156_v5, %v162_v10  ;;  %v202_v12 = vsub.f32 %v157_v9, %v163_v13 }
  0x53   :  { %v174_v23 = vand.u32 2147483648, %v657_v2  ;;  %vm179_vm4 = vcmp.eq.f32.partialorder %v662_v3, inf  ;;  %vm181_vm5 = vcmp.eq.f32.partialorder %v662_v3, 0.0  ;;  %v182_v24 = vand.u32 2147483648, %v662_v3 }
  0x54   :  { %v331_v4 = vadd.f32 %v330_v57, %v323_v14  ;;  %vm187_vm6 = vcmp.eq.f32.partialorder %v666_v8, inf  ;;  %vm189_vm7 = vcmp.eq.f32.partialorder %v666_v8, 0.0  ;;  %v190_v29 = vand.u32 2147483648, %v666_v8 }
  0x55   :  { %vm195_vm8 = vcmp.eq.f32.partialorder %v670_v15, inf  ;;  %v198_v33 = vand.u32 2147483648, %v670_v15  ;;  %v201_v34 = vmul.f32 %v200_v11, %v200_v11  ;;  %v203_v35 = vmul.f32 %v202_v12, %v202_v12 }
  0x56   :  { %v339_v25 = vadd.f32 %v338_v18, %v331_v4  ;;  %vm197_vm9 = vcmp.eq.f32.partialorder %v670_v15, 0.0  ;;  %v166_v40 = vsub.f32 %v160_v1, %v155_v0  ;;  %v53_v56 = vmul.f32 %v49_v44, %v49_v44 }
  0x57   :  { %v204_v48 = vadd.f32 %v203_v35, %v201_v34 }
  0x58   :  { %v477_v20 = vpop.eup %476  ;;  %v347_v7 = vadd.f32 %v346_v17, %v339_v25  ;;  %v167_v51 = vmul.f32 %v166_v40, %v166_v40 }
  0x59   :  { %v170_v21 = vmul.f32 %v477_v20, %v657_v2  ;;  %v479_v22 = vpop.eup %478 }
  0x5a   :  { %v481_v26 = vpop.eup %480  ;;  %v178_v28 = vmul.f32 %v479_v22, %v662_v3  ;;  %v355_v53 = vadd.f32 %v354_v6, %v347_v7  ;;  %v373_v5 = vmul.f32 2.0, %v167_v51 }
  0x5b   :  { %v172_v27 = vsel %vm171_vm2, %v657_v2, %v170_v21  ;;  %v483_v30 = vpop.eup %482  ;;  %v186_v32 = vmul.f32 %v481_v26, %v666_v8  ;;  %v368_v2 = vld [vmem:[#allocation5 + $0xe8] sm:$0xff] }
  0x5c   :  { %v175_v37 = vsel %vm173_vm3, %v174_v23, %v172_v27  ;;  %v180_v38 = vsel %vm179_vm4, %v662_v3, %v178_v28  ;;  %v194_v39 = vmul.f32 %v483_v30, %v670_v15  ;;  %v52_v3 = vsub.f32 %v677_v63, %v51_v36 }
  0x5d   :  { %v183_v41 = vsel %vm181_vm5, %v182_v24, %v180_v38  ;;  %v188_v42 = vsel %vm187_vm6, %v666_v8, %v186_v32  ;;  %v369_v50 = vsub.f32 %v366_v43, %v368_v2  ;;  %v363_v60 = vadd.f32 %v362_v54, %v355_v53 }
  0x5e   :  { %v191_v45 = vsel %vm189_vm7, %v190_v29, %v188_v42  ;;  %v196_v16 = vsel %vm195_vm8, %v670_v15, %v194_v39  ;;  %v54_v57 = vmul.f32 %v52_v3, %v52_v3  ;;  %v161_v15 = vsel %vm637_vm1, %v677_v63, %v675_v62 }
  0x5f   :  { %v199_v47 = vsel %vm197_vm9, %v198_v33, %v196_v16  ;;  %v205_v46 = vsub.f32 %v175_v37, %v191_v45  ;;  %v370_v61 = vmul.f32 %v369_v50, %v369_v50  ;;  %v211_v10 = vmul.f32 %v161_v15, %v161_v15 }
  0x60   :  { %v208_v49 = vsub.f32 %v183_v41, %v199_v47  ;;  %v55_v9 = vadd.f32 %v54_v57, %v53_v56 }
  0x61   :  { %v206_v52 = vmul.f32 %v205_v46, %v205_v46  ;;  %v371_v14 = vadd.f32 %v370_v61, %v363_v60 }
  0x62   :  { %v209_v55 = vmul.f32 %v208_v49, %v208_v49  ;;  %v377_v19 = vmul.f32 0.5, %v55_v9 }
  0x63   :  { %v207_v8 = vadd.f32 %v206_v52, %v204_v48 }
  0x65   :  { %v210_v59 = vadd.f32 %v209_v55, %v207_v8 }
  0x67   :  { %v372_v13 = vmul.f32 5.0, %v210_v59 }
  0x69   :  { %v374_v18 = vadd.f32 %v373_v5, %v372_v13 }
  0x6b   :  { %v375_v17 = vadd.f32 %v374_v18, %v211_v10 }
  0x6d   :  { %v376_v0 = vadd.f32 %v375_v17, %v371_v14 }
  0x6f   :  { %v378_v1 = vsel %vm43_vm0, %v376_v0, %v377_v19 }
  0x70   :  { %380 = vadd.xlane.f32.xlu0 %v378_v1 }
  0xfd   :  { %v381_v4 = vpop.xlane.xlu0 %380 }
  0xfe   :  { %v382_v6 = vrot.slane %v381_v4, 4 }
 0x100   :  { %v383_v31 = vadd.f32 %v382_v6, %v381_v4 }
 0x102   :  { %v384_v62 = vrot.slane %v383_v31, 2 }
 0x104   :  { %v385_v63 = vadd.f32 %v384_v62, %v383_v31 }
 0x106   :  { %v386_v20 = vrot.slane %v385_v63, 1 }
 0x108   :  { %v387_v11 = vadd.f32 %v386_v20, %v385_v63 }
 0x10a   :  { %465 = vpush %v387_v11 }
 0x13b   :  { %s466_s1 = spop %465 }
 0x13c   :  { %s389_s6 = smul.f32 0.5, %s466_s1 }
 0x13e   :  { %391 = sst [smem:[#allocation7]] %s389_s6 }
 0x13f   :  { %537 = shalt.err (!%p534_p4)
}
 0x140   :  { %s548_s14 = smov [#allocation7]  }
 0x141   :  { %399 = dma.smem_to_hbm %s548_s14, 16, %s754_s2, [#allocation4]  }
 0x142   :  { %542 = dma.done.wait [#allocation4], 16  }
 0x143   :  { %543 = vsyncadd [#allocation4], 4294967280 }
 0x144   :  { %403 = sfence }
 0x145   :  { %404 = vsyncpa [#allocation3], 1 }
 0x146   :  { %405 = vsyncpa [#allocation6], 1 }
 0x147   :  { %406 = vsyncpa [#allocation4], 1 }

</bundles_post_ra>
